<compile_context>
chip_gen: v6e
topology: v6e:2x2x1
jax: 0.10.0
libtpu: 0.0.40
codegen_flags: <defaults>
</compile_context>

<pallas_src>
import jax
import jax.numpy as jnp
from jax.experimental import pallas as pl
from jax.experimental.pallas import tpu as pltpu


def _logreg_kernel(x_ref, w_ref, b_ref, o_ref):
    x = x_ref[...].astype(jnp.float32)          # (tile_b, F)
    w = w_ref[...].astype(jnp.float32)          # (1, F) lane-dense weight row
    b = b_ref[0, 0]                             # scalar bias from SMEM
    # Per-row dot product on the VPU (mul) + XLU (lane reduce); N=1 so the MXU
    # would leave almost all output lanes dead.
    logits = jnp.sum(x * w, axis=-1, keepdims=True) + b      # (tile_b, 1)
    # Relayout to lane-dense before the sigmoid: ~128x fewer EUP ops and an
    # unmasked store instead of tile_b/8 single-lane masked stores.
    logits_row = logits.reshape(1, -1)                        # (1, tile_b)
    o_ref[...] = jax.nn.sigmoid(logits_row).astype(o_ref.dtype)


def _vmem_capacity_bytes():
    """Best-effort physical VMEM query; 0 means 'unknown'."""
    try:
        info = pltpu.get_tpu_info()
        return int(getattr(info, "vmem_capacity_bytes", 0) or 0)
    except Exception:
        return 0


def _choose_tile_b(B, F, itemsize, x_budget_bytes, max_tile_rows=None):
    """Largest batch tile whose two (double-buffered) x tiles fit the budget,
    capped at ~half the batch so the grid has >=2 steps (v7x megacore)."""
    bytes_per_row = max(1, F * itemsize)
    rows = x_budget_bytes // (2 * bytes_per_row)
    half = -(-B // 2)                       # ceil(B/2)
    half = -(-half // 128) * 128            # round up to a lane-dense multiple
    tile_b = min(rows, half)
    if max_tile_rows is not None:           # test / tuning knob
        tile_b = min(tile_b, max_tile_rows)
    if tile_b >= B:
        return B                            # single full-extent block
    # Tiled: keep the (1, tile_b) output block lane-aligned (multiple of 128),
    # which also keeps the (tile_b, F) input block sublane-aligned.
    return max(128, (tile_b // 128) * 128)


def logistic_regression(x, weight, bias, *, max_tile_rows=None):
    """x: (B, F); weight: (1, F) (PyTorch nn.Linear layout); bias: (1,) -> (B, 1) f32."""
    B, F = x.shape
    weight = jnp.asarray(weight).reshape(1, F)
    bias = jnp.asarray(bias, jnp.float32).reshape(1, 1)

    itemsize = jnp.dtype(x.dtype).itemsize
    vmem_cap = _vmem_capacity_bytes()
    if vmem_cap == 0:
        # Unknown part: stay within the default scoped-VMEM limit everywhere.
        vmem_limit, x_budget = 32 << 20, 24 << 20
    elif vmem_cap <= (64 << 20):
        # v7x-class: 64 MiB physical VMEM -> leave headroom for Mosaic scratch.
        vmem_limit, x_budget = 40 << 20, 28 << 20
    else:
        # v5e / v6e: 128 MiB physical VMEM -> big tiles, fewer grid steps.
        vmem_limit, x_budget = 100 << 20, 88 << 20

    tile_b = _choose_tile_b(B, F, itemsize, x_budget, max_tile_rows)
    grid = (pl.cdiv(B, tile_b),)

    cost = pl.CostEstimate(
        flops=2 * B * F + 2 * B,
        transcendentals=B,
        bytes_accessed=int(x.size) * itemsize
        + int(weight.size) * jnp.dtype(weight.dtype).itemsize
        + 4 + 4 * B,
    )

    out_row = pl.pallas_call(
        _logreg_kernel,
        out_shape=jax.ShapeDtypeStruct((1, B), jnp.float32),
        grid_spec=pltpu.PrefetchScalarGridSpec(
            num_scalar_prefetch=0,
            grid=grid,
            in_specs=[
                # x: batch-tiled, double-buffered; last dim is the real (unpadded) F.
                pl.BlockSpec((tile_b, F), lambda i: (i, 0)),
                # weight row: same block every step -> stays VMEM-resident.
                pl.BlockSpec((1, F), lambda i: (0, 0)),
                # bias: (1, 1) scalar in SMEM.
                pl.BlockSpec(memory_space=pltpu.MemorySpace.SMEM),
            ],
            out_specs=pl.BlockSpec((1, tile_b), lambda i: (0, i)),
        ),
        compiler_params=pltpu.CompilerParams(
            dimension_semantics=("parallel",),
            vmem_limit_bytes=vmem_limit,
        ),
        cost_estimate=cost,
    )(x, weight, bias)

    return out_row.reshape(B, 1)


if __name__ == "__main__":
    key = jax.random.PRNGKey(0)
    batch = 8
    n_input_features = 32

    kx, kw, kb, kx2 = jax.random.split(key, 4)
    x = jax.random.normal(kx, (batch, n_input_features), dtype=jnp.float32)

    # Deterministic params mirroring nn.Linear's uniform(-1/sqrt(F), 1/sqrt(F)).
    bound = 1.0 / jnp.sqrt(jnp.float32(n_input_features))
    weight = jax.random.uniform(
        kw, (1, n_input_features), minval=-bound, maxval=bound, dtype=jnp.float32
    )
    bias = jax.random.uniform(kb, (1,), minval=-bound, maxval=bound, dtype=jnp.float32)

    out = logistic_regression(x, weight, bias)
    out = jax.block_until_ready(out)

    ref = jax.nn.sigmoid(x @ weight.T + bias)
    assert out.shape == (batch, 1)
    assert jnp.allclose(out, ref, atol=1e-5, rtol=1e-5)

    # Second check: force batch tiling with a non-divisible B (300 = 2*128 + 44)
    # to exercise the partial last block + lane-dense masked writeback path.
    x2 = jax.random.normal(kx2, (300, n_input_features), dtype=jnp.float32)
    out2 = jax.block_until_ready(
        logistic_regression(x2, weight, bias, max_tile_rows=128)
    )
    ref2 = jax.nn.sigmoid(x2 @ weight.T + bias)
    assert out2.shape == (300, 1)
    assert jnp.allclose(out2, ref2, atol=1e-5, rtol=1e-5)

    print("KERNEL_OK")
</pallas_src>

<mosaic_0001>
module attributes {stable_mosaic.version = 11 : i64} {
  func.func @_logreg_kernel(%arg0: i32, %arg1: memref<8x32xf32, #tpu.memory_space<vmem>>, %arg2: memref<1x32xf32, #tpu.memory_space<vmem>>, %arg3: memref<1x1xf32, #tpu.memory_space<smem>>, %arg4: memref<1x8xf32, #tpu.memory_space<vmem>>) attributes {dimension_semantics = [#tpu.dimension_semantics<parallel>], iteration_bounds = array<i64: 1>, scalar_prefetch = 0 : i64, scratch_operands = 0 : i64, tpu.core_type = #tpu.core_type<tc>, window_params = [{transform_indices = @transform_0, window_bounds = array<i64: 8, 32>}, {pipeline_mode = #tpu.pipeline_mode<synchronous>, transform_indices = @transform_1, window_bounds = array<i64: 1, 32>}, {transform_indices = @transform_2, window_bounds = array<i64: 1, 1>}, {transform_indices = @transform_3, window_bounds = array<i64: 1, 8>}]} {
    %c0 = arith.constant 0 : index
    %c0_0 = arith.constant 0 : index
    %0 = vector.load %arg1[%c0, %c0_0] : memref<8x32xf32, #tpu.memory_space<vmem>>, vector<8x32xf32>
    %c0_1 = arith.constant 0 : index
    %c0_2 = arith.constant 0 : index
    %1 = vector.load %arg2[%c0_1, %c0_2] : memref<1x32xf32, #tpu.memory_space<vmem>>, vector<1x32xf32>
    %c0_3 = arith.constant 0 : index
    %c0_4 = arith.constant 0 : index
    %2 = memref.load %arg3[%c0_3, %c0_4] : memref<1x1xf32, #tpu.memory_space<smem>>
    %3 = vector.broadcast %1 : vector<1x32xf32> to vector<8x32xf32>
    %4 = arith.mulf %0, %3 : vector<8x32xf32>
    %cst = arith.constant dense<0.000000e+00> : vector<8xf32>
    %5 = vector.multi_reduction <add>, %4, %cst [1] : vector<8x32xf32> to vector<8xf32>
    %6 = vector.shape_cast %5 : vector<8xf32> to vector<8x1xf32>
    %7 = vector.broadcast %2 : f32 to vector<8x1xf32>
    %8 = arith.addf %6, %7 : vector<8x1xf32>
    %9 = vector.shape_cast %8 : vector<8x1xf32> to vector<1x8xf32>
    %10 = arith.negf %9 : vector<1x8xf32>
    %11 = math.exp %10 : vector<1x8xf32>
    %cst_5 = arith.constant 1.000000e+00 : f32
    %12 = vector.broadcast %cst_5 : f32 to vector<1x8xf32>
    %13 = arith.addf %12, %11 : vector<1x8xf32>
    %14 = arith.divf %12, %13 : vector<1x8xf32>
    %c0_6 = arith.constant 0 : index
    %c0_7 = arith.constant 0 : index
    %15 = vector.load %arg4[%c0_6, %c0_7] : memref<1x8xf32, #tpu.memory_space<vmem>>, vector<1x8xf32>
    tpu.vector_store %arg4[%c0_6, %c0_7], %14 {strides = array<i32>} : memref<1x8xf32, #tpu.memory_space<vmem>>, vector<1x8xf32>,
    return
  }
  func.func @transform_0(%arg0: i32) -> (i32, i32) {
    %c0_i32 = arith.constant 0 : i32
    %c0_i32_0 = arith.constant 0 : i32
    return %arg0, %c0_i32 : i32, i32
  }
  func.func @transform_1(%arg0: i32) -> (i32, i32) {
    %c0_i32 = arith.constant 0 : i32
    %c0_i32_0 = arith.constant 0 : i32
    %c0_i32_1 = arith.constant 0 : i32
    return %c0_i32, %c0_i32_0 : i32, i32
  }
  func.func @transform_2(%arg0: i32) -> (i32, i32) {
    %c0_i32 = arith.constant 0 : i32
    %c0_i32_0 = arith.constant 0 : i32
    %c0_i32_1 = arith.constant 0 : i32
    return %c0_i32, %c0_i32_0 : i32, i32
  }
  func.func @transform_3(%arg0: i32) -> (i32, i32) {
    %c0_i32 = arith.constant 0 : i32
    %c0_i32_0 = arith.constant 0 : i32
    return %c0_i32, %arg0 : i32, i32
  }
}

</mosaic_0001>

<bundles_post_ra>
// kernel: tpu_custom_call.1
= control target key start
LH: loop header
LB: loop body
LE: loop exit
PB: predicated region body
PF: predicated region fallthrough
CT: control target
= control target key end

     0   :  { %9 = vsyncpa [#allocation4], 0  ;;  %s161_s0 = inlined_call_operand.hbm [shape: f32[8,32], index: 0, kind: input, shape index: {}]   ;;  %s162_s1 = inlined_call_operand.vmem [shape: f32[1,32], index: 1, kind: input, shape index: {}]   ;;  %s163_s2 = inlined_call_operand.<no memory space> [shape: f32[1,1], index: 2, kind: input, shape index: {}]   ;;  %s164_s3 = inlined_call_operand.hbm [shape: f32[1,8], index: 3, kind: output, shape index: {}]  }
   0x1   :  { %10 = vsyncpa [#allocation5], 0  ;;  %s127_s12 = smov [#allocation3]  }
   0x2   :  { %s17_s13 = sshll.u32 %s127_s12, 4  ;;  %s18_s13 = int_to_ptr.vmem [resolvable:$true] %s17_s13 }
   0x3   :  { %s91_s14 = scalar_lea.vmem %s18_s13, 128  ;;  %p96_p1 = scmp.lt.s32.totalorder %s18_s13, %s18_s13 }
   0x4   :  { %p92_p0 = scmp.ne.s32.totalorder %s18_s13, %s91_s14  ;;  %p97_p2 = scmp.lt.s32.totalorder %s91_s14, %s91_s14 }
   0x6   :  { %p98_p3 = por %p97_p2, %p96_p1 }
   0x8   :  { %p99_p4 = pnand %p98_p3, %p92_p0 }
   0xa   :  { %102 = shalt.err (!%p99_p4)
}
   0xb   :  { %20 = dma.hbm_to_vmem [thread:$0]  %s161_s0, 128, %s18_s13, [#allocation4]  }
   0xc   :  { %123 = dma.done.wait [#allocation4], 128  }
   0xd   :  { %124 = vsyncadd [#allocation4], 4294967168  ;;  %v28_v0 = vld [vmem:[#allocation3] sm:$0xff]  ;;  %vm38_vm0 = vcmask 261120   ;;  %v42_v4 = vstv %s163_s2  ;;  %v51_v10 = vlaneseq  ;;  %s128_s0 = smov [#allocation6]   ;;  %vm58_vm1 = vcmask 57344  }
   0xe   :  { %v75_v1 = vld [vmem:[%s162_s1] ss:$0 sm:$0xff]  ;;  %s66_s1 = sshll.u32 %s128_s0, 4  ;;  %s67_s1 = int_to_ptr.vmem [resolvable:$true] %s66_s1 }
   0xf   :  { %v37_v2 = vmul.f32 %v75_v1, %v28_v0  ;;  %v52_v11 = vand.u32 127, %v51_v10  ;;  %v54_v12 = vshrl.u32 %v51_v10, 7  ;;  %s103_s21 = scalar_lea.vmem %s67_s1, 16  ;;  %s107_s2 = scalar_lea.vmem %s67_s1, 32 }
  0x10   :  { %p104_p5 = scmp.ne.s32.totalorder %s67_s1, %s103_s21  ;;  %p108_p6 = scmp.lt.s32.totalorder %s67_s1, %s67_s1 }
  0x11   :  { %v39_v3 = vsel %vm38_vm0, %v37_v2, 0.0  ;;  %v55_v13 = vsub.s32 %v52_v11, %v54_v12  ;;  %p109_p7 = scmp.lt.s32.totalorder %s107_s2, %s103_s21 }
  0x12   :  { %40 = vadd.xlane.f32.xlu0 %v39_v3 }
  0x13   :  { %p110_p8 = por %p109_p7, %p108_p6 }
  0x15   :  { %p111_p9 = pnand %p110_p8, %p104_p5 }
  0x9b   :  { %v41_v5 = vpop.xlane.xlu0 %40 }
  0x9c   :  { %v43_v6 = vadd.f32 %v42_v4, %v41_v5 }
  0x9e   :  { %v76_v7 = vmul.f32 -1.442695, %v43_v6 }
  0xa0   :  { %79 = vpow2.f32 %v76_v7 }
  0xad   :  { %v80_v8 = vpop.eup %79 }
  0xae   :  { %v47_v9 = vadd.f32 1.0, %v80_v8 }
  0xb0   :  { %81 = vrcp.f32 %v47_v9 }
  0xbd   :  { %v82_v14 = vpop.eup %81 }
  0xbe   :  { %v56_v15 = vrot.slane %v82_v14, %v55_v13 }
  0xc0   :  { %59 = vst.msk [vmem:[#allocation6] sm:$0x1] %vm58_vm1, %v56_v15 }
  0xc1   :  { %114 = shalt.err (!%p111_p9)
}
  0xc2   :  { %69 = dma.vmem_to_hbm [thread:$0]  %s67_s1, 16, %s164_s3, [#allocation5]  }
  0xc3   :  { %125 = dma.done.wait [#allocation5], 16  }
  0xc4   :  { %126 = vsyncadd [#allocation5], 4294967280 }
  0xc5   :  { %73 = vsyncpa [#allocation4], 1 }
  0xc6   :  { %74 = vsyncpa [#allocation5], 1 }

</bundles_post_ra>
